<compile_context>
chip_gen: v7x
topology: tpu7x:2x2x1
jax: 0.10.0
libtpu: 0.0.40
codegen_flags: <defaults>
</compile_context>

<pallas_src>
import jax
import jax.numpy as jnp
from jax.experimental import pallas as pl
from jax.experimental.pallas import tpu as pltpu


_TARGET_BLOCK_BYTES = 4 * 1024 * 1024      # ~4 MiB per x/out block
_VMEM_LIMIT_BYTES = 48 * 1024 * 1024       # safe headroom on v5e/v6e/v7x


def _add_pe_kernel(x_ref, p_ref, o_ref):
    # x_ref / o_ref: (TILE_B, TILE_N); p_ref: (1, TILE_N) broadcast over rows.
    # dropout(p=0.0) is the identity, so no masking is applied.
    # TODO(synk): non-zero dropout would need pltpu.prng_seed/prng_random_bits.
    o_ref[...] = x_ref[...] + p_ref[...]


def build_positional_table(seq_len, num_hiddens, dtype=jnp.float32):
    """Replicates the PyTorch buffer construction (sin at 2k, cos at 2k+1)."""
    pos = jnp.arange(1, seq_len + 1, dtype=jnp.float32).reshape(-1, 1)
    div = jnp.power(
        jnp.float32(10000.0),
        jnp.arange(0, num_hiddens, 2, dtype=jnp.float32) / num_hiddens)
    ang = pos / div                                        # (L, ceil(H/2))
    p = jnp.zeros((seq_len, num_hiddens), dtype=jnp.float32)
    p = p.at[:, 0::2].set(jnp.sin(ang))
    p = p.at[:, 1::2].set(jnp.cos(ang)[:, : num_hiddens // 2])
    return p.astype(dtype)


def _round_up(v, m):
    return ((v + m - 1) // m) * m


def positional_encoding_forward(x, p=None):
    """x: (B, L, H). Returns x + P[:, :L, :] (dropout p=0 -> identity)."""
    B, L, H = x.shape
    if p is None:
        p = build_positional_table(L, H, x.dtype)
    else:
        p = p[:L].astype(x.dtype)

    N = L * H
    # Lane-dense slab: last dim = L*H, broadcast P over the batch (row) axis.
    x2 = x.reshape(B, N)
    p2 = p.reshape(1, N)

    itemsize = jnp.dtype(x.dtype).itemsize

    # Row (batch) tile: multiple of 8 (or the full, possibly < 8, extent).
    tile_b = B if B <= 64 else min(_round_up(B, 8), 64)

    # Column tile: multiple of 128 (or covers N in one padded block), sized so
    # a (tile_b, tile_n) block is ~4 MiB.
    col_cap = max(128, (_TARGET_BLOCK_BYTES // (tile_b * itemsize)) // 128 * 128)
    tile_n = min(_round_up(N, 128), col_cap)

    n_col = pl.cdiv(N, tile_n)
    n_row = pl.cdiv(B, tile_b)

    out2 = pl.pallas_call(
        _add_pe_kernel,
        out_shape=jax.ShapeDtypeStruct((B, N), x.dtype),
        grid_spec=pltpu.PrefetchScalarGridSpec(
            num_scalar_prefetch=0,
            # Column axis OUTER so the P tile's block index is constant across
            # the inner row (batch) steps -> fetched once per column block and
            # kept VMEM-resident while batches stream through.
            grid=(n_col, n_row),
            in_specs=[
                pl.BlockSpec((tile_b, tile_n), lambda c, r: (r, c)),
                pl.BlockSpec((1, tile_n), lambda c, r: (0, c)),
            ],
            out_specs=pl.BlockSpec((tile_b, tile_n), lambda c, r: (r, c)),
        ),
        compiler_params=pltpu.CompilerParams(
            dimension_semantics=("parallel", "parallel"),
            vmem_limit_bytes=_VMEM_LIMIT_BYTES),
    )(x2, p2)
    return out2.reshape(B, L, H)


def _reference(x):
    """Independent pure-JAX replica of the PyTorch buffer construction + forward."""
    B, L, H = x.shape
    pos = jnp.arange(1, L + 1, dtype=jnp.float32)[:, None]
    j = jnp.arange(H)
    inv = jnp.power(jnp.float32(10000.0), (2.0 * (j // 2)).astype(jnp.float32) / H)
    ang = pos / inv[None, :]
    P = jnp.where((j % 2) == 0, jnp.sin(ang), jnp.cos(ang))
    return x + P[None, :, :].astype(x.dtype)


if __name__ == "__main__":
    key = jax.random.PRNGKey(0)
    B, L, H = 2, 8, 32                      # small shapes; H even as the module requires
    x = jax.random.normal(key, (B, L, H), dtype=jnp.float32)

    out = jax.block_until_ready(positional_encoding_forward(x))

    ref = _reference(x)
    assert out.shape == (B, L, H) and out.dtype == x.dtype
    assert jnp.allclose(out, ref, atol=1e-5, rtol=1e-5), "mismatch vs reference"

    print("KERNEL_OK")
</pallas_src>

<mosaic_0001>
module attributes {stable_mosaic.version = 11 : i64} {
  func.func @_add_pe_kernel(%arg0: i32, %arg1: i32, %arg2: memref<2x256xf32, #tpu.memory_space<vmem>>, %arg3: memref<1x256xf32, #tpu.memory_space<vmem>>, %arg4: memref<2x256xf32, #tpu.memory_space<vmem>>) attributes {dimension_semantics = [#tpu.dimension_semantics<parallel>, #tpu.dimension_semantics<parallel>], iteration_bounds = array<i64: 1, 1>, scalar_prefetch = 0 : i64, scratch_operands = 0 : i64, tpu.core_type = #tpu.core_type<tc>, window_params = [{transform_indices = @transform_0, window_bounds = array<i64: 2, 256>}, {transform_indices = @transform_1, window_bounds = array<i64: 1, 256>}, {transform_indices = @transform_2, window_bounds = array<i64: 2, 256>}]} {
    %c0 = arith.constant 0 : index
    %c0_0 = arith.constant 0 : index
    %0 = vector.load %arg2[%c0, %c0_0] : memref<2x256xf32, #tpu.memory_space<vmem>>, vector<2x256xf32>
    %c0_1 = arith.constant 0 : index
    %c0_2 = arith.constant 0 : index
    %1 = vector.load %arg3[%c0_1, %c0_2] : memref<1x256xf32, #tpu.memory_space<vmem>>, vector<1x256xf32>
    %2 = vector.broadcast %1 : vector<1x256xf32> to vector<2x256xf32>
    %3 = arith.addf %0, %2 : vector<2x256xf32>
    %c0_3 = arith.constant 0 : index
    %c0_4 = arith.constant 0 : index
    %4 = vector.load %arg4[%c0_3, %c0_4] : memref<2x256xf32, #tpu.memory_space<vmem>>, vector<2x256xf32>
    tpu.vector_store %arg4[%c0_3, %c0_4], %3 {strides = array<i32>} : memref<2x256xf32, #tpu.memory_space<vmem>>, vector<2x256xf32>,
    return
  }
  func.func @transform_0(%arg0: i32, %arg1: i32) -> (i32, i32) {
    %c0_i32 = arith.constant 0 : i32
    return %arg1, %arg0 : i32, i32
  }
  func.func @transform_1(%arg0: i32, %arg1: i32) -> (i32, i32) {
    %c0_i32 = arith.constant 0 : i32
    %c0_i32_0 = arith.constant 0 : i32
    return %c0_i32, %arg0 : i32, i32
  }
  func.func @transform_2(%arg0: i32, %arg1: i32) -> (i32, i32) {
    %c0_i32 = arith.constant 0 : i32
    return %arg1, %arg0 : i32, i32
  }
}

</mosaic_0001>

<bundles_post_ra>
// kernel: tpu_custom_call.1
= control target key start
LH: loop header
LB: loop body
LE: loop exit
PB: predicated region body
PF: predicated region fallthrough
CT: control target
= control target key end

     0   :  { %7 = vsyncpa [#allocation3], 0  ;;  %s157_s0 = inlined_call_operand.hbm [shape: f32[2,256], index: 0, kind: input, shape index: {}]   ;;  %s158_s1 = inlined_call_operand.vmem [shape: f32[1,256], index: 1, kind: input, shape index: {}]   ;;  %s159_s2 = inlined_call_operand.hbm [shape: f32[2,256], index: 2, kind: output, shape index: {}]  }
   0x1   :  { %8 = vsyncpa [#allocation4], 0  ;;  %s112_s9 = smov [#allocation2]   ;;  %s64_s13 = scalar_lea.hbm %s157_s0, 64 }
   0x2   :  { %s15_s10 = sshll.u32 %s112_s9, 4  ;;  %p65_p0 = scmp.ne.s32.totalorder %s157_s0, %s64_s13  ;;  %s16_s10 = int_to_ptr.vmem [resolvable:$true] %s15_s10 }
   0x3   :  { %p68_p1 = scmp.lt.u32.totalorder %s64_s13, %s157_s0 }
   0x5   :  { %p70_p2 = pnand %p68_p1, %p65_p0 }
   0x7   :  { %73 = shalt.err (!%p70_p2)
}
   0x8   :  { %s74_s18 = scalar_lea.vmem %s16_s10, 64  ;;  %p79_p4 = scmp.lt.s32.totalorder %s16_s10, %s16_s10 }
   0x9   :  { %p75_p3 = scmp.ne.s32.totalorder %s16_s10, %s74_s18  ;;  %p80_p5 = scmp.lt.s32.totalorder %s74_s18, %s74_s18 }
   0xb   :  { %p81_p6 = por %p80_p5, %p79_p4 }
   0xd   :  { %p82_p7 = pnand %p81_p6, %p75_p3 }
   0xf   :  { %85 = shalt.err (!%p82_p7)
}
  0x10   :  { %18 = dma.hbm_to_vmem [thread:$0]  %s157_s0, 64, %s16_s10, [#allocation3]  }
  0x11   :  { %108 = dma.done.wait [#allocation3], 64  }
  0x12   :  { %109 = vsyncadd [#allocation3], 4294967232  ;;  %v27_v0 = vlaneseq  ;;  %v113_v1 = vmov 1983009808   ;;  %v25_v7 = vld [vmem:[%s158_s1] sm:$0x3] }
  0x13   :  { %v37_v2 = vunpack.c.l.s4 %v113_v1  ;;  %v24_v12 = vld [vmem:[#allocation2] sm:$0xf]  ;;  %s114_s23 = smov [#allocation5]  }
  0x14   :  { %v28_v3 = vshrl.u32 %v27_v0, 7  ;;  %s52_s0 = sshll.u32 %s114_s23, 4  ;;  %s53_s0 = int_to_ptr.vmem [resolvable:$true] %s52_s0 }
  0x15   :  { %v38_v6 = vunpack.c.0.s8 %v37_v2  ;;  %s86_s24 = scalar_lea.vmem %s53_s0, 64  ;;  %p91_p9 = scmp.lt.s32.totalorder %s53_s0, %s53_s0 }
  0x16   :  { %v29_v4 = vsub.s32 0, %v28_v3  ;;  %v33_v5 = vsub.s32 1, %v28_v3  ;;  %p87_p8 = scmp.ne.s32.totalorder %s53_s0, %s86_s24  ;;  %p92_p10 = scmp.lt.s32.totalorder %s86_s24, %s86_s24 }
  0x17   :  { %v41_v10 = vsub.s32 %v38_v6, %v28_v3 }
  0x18   :  { %v30_v8 = vrot.slane %v25_v7, %v29_v4  ;;  %v34_v9 = vrot.slane %v25_v7, %v33_v5  ;;  %p93_p11 = por %p92_p10, %p91_p9 }
  0x1a   :  { %v35_v11 = vcombine.low %v30_v8, %v34_v9  ;;  %p94_p12 = pnand %p93_p11, %p87_p8 }
  0x1c   :  { %v42_v13 = vrot.slane %v35_v11, %v41_v10 }
  0x1e   :  { %v44_v14 = vadd.f32 %v42_v13, %v24_v12 }
  0x20   :  { %45 = vst [vmem:[#allocation5] sm:$0xf] %v44_v14 }
  0x21   :  { %97 = shalt.err (!%p94_p12)
}
  0x22   :  { %s98_s26 = scalar_lea.hbm %s159_s2, 64 }
  0x23   :  { %p99_p13 = scmp.ne.s32.totalorder %s159_s2, %s98_s26  ;;  %p102_p0 = scmp.lt.u32.totalorder %s98_s26, %s159_s2 }
  0x25   :  { %p104_p1 = pnand %p102_p0, %p99_p13 }
  0x27   :  { %107 = shalt.err (!%p104_p1)
}
  0x28   :  { %55 = dma.vmem_to_hbm [thread:$0]  %s53_s0, 64, %s159_s2, [#allocation4]  }
  0x29   :  { %110 = dma.done.wait [#allocation4], 64  }
  0x2a   :  { %111 = vsyncadd [#allocation4], 4294967232 }
  0x2b   :  { %59 = vsyncpa [#allocation3], 1 }
  0x2c   :  { %60 = vsyncpa [#allocation4], 1 }

</bundles_post_ra>
